<compile_context>
chip_gen: v7x
topology: tpu7x:2x2x1
jax: 0.10.0
libtpu: 0.0.40
codegen_flags: <defaults>
</compile_context>

<pallas_src>
import jax
import jax.numpy as jnp
from jax.experimental import pallas as pl
from jax.experimental.pallas import tpu as pltpu

LINEAR_SCALE = 5000.0


# ---------------------------------------------------------------------------
# Pallas kernel
# ---------------------------------------------------------------------------
def _posenc_kernel(noise_ref, freq_ref, o_ref):
    """noise_ref: (TB, 1) f32; freq_ref: (1, half) f32; o_ref: (TB, 2*half).

    o[:, :half] = sin(5000 * noise * freqs), o[:, half:] = cos(...)."""
    half = freq_ref.shape[-1]

    nl = noise_ref[...]                          # (TB, 1)
    freqs = freq_ref[...]                        # (1, half)

    # Same op order as the PyTorch forward: (LINEAR_SCALE * noise) * freqs.
    arg = (LINEAR_SCALE * nl) * freqs            # (TB, half) via broadcast

    o_ref[:, :half] = jnp.sin(arg).astype(o_ref.dtype)
    o_ref[:, half:] = jnp.cos(arg).astype(o_ref.dtype)


# ---------------------------------------------------------------------------
# Wrapper
# ---------------------------------------------------------------------------
def _pick_batch_tile(batch):
    """Return a batch tile for the gridded (large-B) path, or None for grid=()."""
    if batch < 1024:  # per-step overhead (~0.35 us) dominates for small batches
        return None
    for tb in (512, 256, 128, 64, 32, 16, 8):
        if batch % tb == 0:
            return tb
    return None


def positional_encoding(noise_level, n_channels, out_dtype=jnp.float32):
    """noise_level: (B,) or (B, 1) float tensor. Returns (B, n_channels)."""
    assert n_channels % 2 == 0, "n_channels must be even"
    noise_level = jnp.asarray(noise_level, jnp.float32)
    # Mirror torch .squeeze(-1): drops the last dim only when it is 1.
    if noise_level.ndim > 1 and noise_level.shape[-1] == 1:
        noise_level = jnp.squeeze(noise_level, -1)
    assert noise_level.ndim == 1, (
        f"expected (B,) or (B, 1) noise level, got shape {noise_level.shape}")

    B = noise_level.shape[0]
    half = n_channels // 2

    nl_2d = noise_level.reshape(B, 1)
    # Half-width frequency table 0.0001 ** (arange(half)/half), shape (1, half).
    freqs_half = (0.0001 ** (jnp.arange(half, dtype=jnp.float32) / float(half))
                  ).reshape(1, half)

    out_itemsize = jnp.dtype(out_dtype).itemsize
    cost = pl.CostEstimate(
        flops=2 * B * half + B,                 # scale mul + broadcast mul
        transcendentals=2 * B * half,           # one sin + one cos per (B, half)
        bytes_accessed=4 * (B + half) + out_itemsize * B * n_channels,
    )
    out_shape = jax.ShapeDtypeStruct((B, n_channels), out_dtype)

    tb = _pick_batch_tile(B)
    if tb is None:
        # Small batch: single block, grid=() -- no pipeline / per-step overhead.
        call = pl.pallas_call(
            _posenc_kernel,
            out_shape=out_shape,
            in_specs=[
                pl.BlockSpec((B, 1), lambda: (0, 0)),
                pl.BlockSpec((1, half), lambda: (0, 0)),
            ],
            out_specs=pl.BlockSpec((B, n_channels), lambda: (0, 0)),
            cost_estimate=cost,
        )
    else:
        # Large batch: parallel grid over B (lets v7x split across its 2 TCs).
        call = pl.pallas_call(
            _posenc_kernel,
            out_shape=out_shape,
            grid=(B // tb,),
            in_specs=[
                pl.BlockSpec((tb, 1), lambda i: (i, 0)),
                pl.BlockSpec((1, half), lambda i: (0, 0)),
            ],
            out_specs=pl.BlockSpec((tb, n_channels), lambda i: (i, 0)),
            compiler_params=pltpu.CompilerParams(
                dimension_semantics=("parallel",)),
            cost_estimate=cost,
        )
    return call(nl_2d, freqs_half)


# ---------------------------------------------------------------------------
# Pure-JAX reference (mirrors the PyTorch forward exactly)
# ---------------------------------------------------------------------------
def reference_forward(noise_level, n_channels):
    noise_level = jnp.asarray(noise_level, jnp.float32)
    if noise_level.ndim > 1 and noise_level.shape[-1] == 1:
        noise_level = jnp.squeeze(noise_level, -1)
    half = n_channels // 2
    exponents = jnp.arange(half, dtype=jnp.float32) / float(half)
    exponents = 0.0001 ** exponents
    exponents = LINEAR_SCALE * noise_level[:, None] * exponents[None, :]
    return jnp.concatenate([jnp.sin(exponents), jnp.cos(exponents)], axis=-1)


# ---------------------------------------------------------------------------
if __name__ == "__main__":
    key = jax.random.PRNGKey(0)

    # --- Small-batch (inference) path: grid=() -------------------------------
    B, n_channels = 2, 32
    noise_level = jax.random.uniform(key, (B, 1), jnp.float32)

    out = jax.block_until_ready(positional_encoding(noise_level, n_channels))
    ref = jax.block_until_ready(reference_forward(noise_level, n_channels))
    assert out.shape == ref.shape == (B, n_channels)
    assert jnp.allclose(out, ref, atol=1e-4, rtol=1e-4), (
        float(jnp.max(jnp.abs(out - ref))))

    # --- Large-batch (training) path: parallel grid over B -------------------
    B2 = 2048
    noise_level2 = jax.random.uniform(jax.random.PRNGKey(1), (B2,), jnp.float32)
    out2 = jax.block_until_ready(positional_encoding(noise_level2, n_channels))
    ref2 = jax.block_until_ready(reference_forward(noise_level2, n_channels))
    assert out2.shape == ref2.shape == (B2, n_channels)
    assert jnp.allclose(out2, ref2, atol=1e-4, rtol=1e-4), (
        float(jnp.max(jnp.abs(out2 - ref2))))

    print("KERNEL_OK")
</pallas_src>

<mosaic_0001>
module attributes {stable_mosaic.version = 11 : i64} {
  func.func @_posenc_kernel(%arg0: memref<2x1xf32, #tpu.memory_space<vmem>>, %arg1: memref<1x16xf32, #tpu.memory_space<vmem>>, %arg2: memref<2x32xf32, #tpu.memory_space<vmem>>) attributes {dimension_semantics = [], scalar_prefetch = 0 : i64, scratch_operands = 0 : i64, tpu.core_type = #tpu.core_type<tc>} {
    %c0 = arith.constant 0 : index
    %c0_0 = arith.constant 0 : index
    %0 = vector.load %arg0[%c0, %c0_0] : memref<2x1xf32, #tpu.memory_space<vmem>>, vector<2x1xf32>
    %c0_1 = arith.constant 0 : index
    %c0_2 = arith.constant 0 : index
    %1 = vector.load %arg1[%c0_1, %c0_2] : memref<1x16xf32, #tpu.memory_space<vmem>>, vector<1x16xf32>
    %cst = arith.constant 5.000000e+03 : f32
    %2 = vector.broadcast %cst : f32 to vector<2x1xf32>
    %3 = arith.mulf %2, %0 : vector<2x1xf32>
    %4 = vector.broadcast %3 : vector<2x1xf32> to vector<2x16xf32>
    %5 = vector.broadcast %1 : vector<1x16xf32> to vector<2x16xf32>
    %6 = arith.mulf %4, %5 : vector<2x16xf32>
    %7 = math.sin %6 : vector<2x16xf32>
    %c0_3 = arith.constant 0 : index
    %c0_4 = arith.constant 0 : index
    %8 = vector.load %arg2[%c0_3, %c0_4] : memref<2x32xf32, #tpu.memory_space<vmem>>, vector<2x16xf32>
    tpu.vector_store %arg2[%c0_3, %c0_4], %7 {strides = array<i32>} : memref<2x32xf32, #tpu.memory_space<vmem>>, vector<2x16xf32>,
    %9 = math.cos %6 : vector<2x16xf32>
    %c0_5 = arith.constant 0 : index
    %c16 = arith.constant 16 : index
    %10 = vector.load %arg2[%c0_5, %c16] : memref<2x32xf32, #tpu.memory_space<vmem>>, vector<2x16xf32>
    tpu.vector_store %arg2[%c0_5, %c16], %9 {strides = array<i32>} : memref<2x32xf32, #tpu.memory_space<vmem>>, vector<2x16xf32>,
    return
  }
}

</mosaic_0001>

<bundles_post_ra>
// kernel: tpu_custom_call.1
= control target key start
LH: loop header
LB: loop body
LE: loop exit
PB: predicated region body
PF: predicated region fallthrough
CT: control target
= control target key end

     0   :  { %v307_v1 = vmov 0   ;;  %s371_s0 = inlined_call_operand.vmem [shape: f32[2,1], index: 0, kind: input, shape index: {}]   ;;  %s372_s1 = inlined_call_operand.vmem [shape: f32[1,16], index: 1, kind: input, shape index: {}]   ;;  %s373_s2 = inlined_call_operand.hbm [shape: f32[2,32], index: 2, kind: output, shape index: {}]  }
   0x1   :  { %v12_v0 = vld [vmem:[%s371_s0] sm:$0x3]  ;;  %278 = vset.pattern.permute.xlu0 %v307_v1 }
   0x2   :  { %v14_v2 = vmul.f32 5000.0, %v12_v0 }
   0x4   :  { %17 = vperm.xlu0 %278, %v14_v2  }
   0x5   :  { %7 = vsyncpa [#allocation3], 0  ;;  %v256_v3 = vld [vmem:[%s372_s1] ss:$0 sm:$0xff]  ;;  %v308_v16 = vmov 683565275  }
   0x6   :  { %v309_v18 = vmov 2475754826   ;;  %v310_v21 = vmov 2131351028   ;;  %v311_v24 = vmov 2102212464  }
   0x7   :  { %v312_v27 = vmov 920167782   ;;  %v313_v30 = vmov 1326507024   ;;  %vm131_vm11 = vcmask 123904   ;;  %s314_s0 = smov 16  }
   0x8   :  { %s315_s1 = smov [#allocation2]  }
   0x9   :  { %s248_s13 = sshll.u32 %s315_s1, 4  ;;  %s249_s13 = int_to_ptr.vmem [resolvable:$true] %s248_s13 }
   0xa   :  { %s283_s14 = scalar_lea.vmem %s249_s13, 32  ;;  %p288_p1 = scmp.lt.s32.totalorder %s249_s13, %s249_s13 }
   0xb   :  { %p284_p0 = scmp.ne.s32.totalorder %s249_s13, %s283_s14  ;;  %p289_p2 = scmp.lt.s32.totalorder %s283_s14, %s283_s14 }
   0xd   :  { %p290_p3 = por %p289_p2, %p288_p1 }
   0xf   :  { %p291_p4 = pnand %p290_p3, %p284_p0 }
  0x83   :  { %v18_v4 = vpop.permute.xlu0 %17 }
  0x84   :  { %v337_v5 = vmul.f32 %v256_v3, %v18_v4 }
  0x86   :  { %v30_v6 = vand.u32 2139095040, %v337_v5  ;;  %v27_v10 = vand.u32 2147483647, %v337_v5  ;;  %vm29_vm7 = vcmp.lt.s32.totalorder %v337_v5, 0 }
  0x88   :  { %v31_v7 = vshrl.u32 %v30_v6, 23  ;;  %v34_v13 = vand.u32 8388607, %v27_v10  ;;  %vm28_vm8 = vcmp.le.f32.partialorder %v27_v10, 0.7853982 }
  0x8a   :  { %v257_v8 = vadd.s32 4294967169, %v31_v7  ;;  %v35_v32 = vor.u32 8388608, %v34_v13 }
  0x8c   :  { %v37_v9 = vadd.s32 1, %v257_v8  ;;  %v75_v46 = vshll.u32 %v35_v32, 8 }
  0x8e   :  { %vm38_vm0 = vcmp.gt.s32.totalorder %v37_v9, 0 }
  0x8f   :  { %v39_v11 = vsel %vm38_vm0, %v37_v9, 0  ;;  %vm119_vm0 = vweird.f32 %v337_v5 }
  0x90   :  { %v41_v12 = vand.u32 31, %v39_v11  ;;  %v40_v15 = vshrl.u32 %v39_v11, 5 }
  0x92   :  { %v42_v14 = vsub.s32 32, %v41_v12  ;;  %v44_v17 = vshll.u32 %v308_v16, %v41_v12  ;;  %v47_v19 = vshll.u32 %v309_v18, %v41_v12  ;;  %v50_v23 = vshll.u32 %v310_v21, %v41_v12 }
  0x93   :  { %v53_v26 = vshll.u32 %v311_v24, %v41_v12  ;;  %v56_v29 = vshll.u32 %v312_v27, %v41_v12  ;;  %vm59_vm1 = vcmp.lt.s32.totalorder %v40_v15, 1  ;;  %vm62_vm2 = vcmp.lt.s32.totalorder %v40_v15, 4 }
  0x94   :  { %v45_v20 = vshrl.u32 %v309_v18, %v42_v14  ;;  %v48_v22 = vshrl.u32 %v310_v21, %v42_v14  ;;  %v51_v25 = vshrl.u32 %v311_v24, %v42_v14  ;;  %v54_v28 = vshrl.u32 %v312_v27, %v42_v14 }
  0x95   :  { %v57_v31 = vshrl.u32 %v313_v30, %v42_v14  ;;  %v43_v41 = vshrl.u32 %v308_v16, %v42_v14  ;;  %vm61_vm3 = vcmp.lt.s32.totalorder %v40_v15, 3  ;;  %vm60_vm4 = vcmp.lt.s32.totalorder %v40_v15, 2 }
  0x96   :  { %v46_v33 = vor.u32 %v45_v20, %v44_v17  ;;  %v49_v34 = vor.u32 %v48_v22, %v47_v19  ;;  %v52_v35 = vor.u32 %v51_v25, %v50_v23  ;;  %v55_v36 = vor.u32 %v54_v28, %v53_v26 }
  0x97   :  { %v58_v37 = vor.u32 %v57_v31, %v56_v29 }
  0x98   :  { %v64_v38 = vsel %vm62_vm2, %v52_v35, 2102212464  ;;  %v67_v39 = vsel %vm59_vm1, %v46_v33, %v49_v34  ;;  %v71_v40 = vsel %vm59_vm1, %v49_v34, %v52_v35  ;;  %v68_v42 = vsel %vm62_vm2, %v55_v36, 920167782 }
  0x99   :  { %v72_v43 = vsel %vm62_vm2, %v58_v37, 1326507024  ;;  %v69_v44 = vsel %vm61_vm3, %v52_v35, %v68_v42  ;;  %v63_v47 = vsel %vm59_vm1, %v43_v41, %v46_v33  ;;  %v65_v48 = vsel %vm61_vm3, %v49_v34, %v64_v38 }
  0x9a   :  { %v73_v45 = vsel %vm61_vm3, %v55_v36, %v72_v43  ;;  %v70_v49 = vsel %vm60_vm4, %v67_v39, %v69_v44  ;;  %v66_v55 = vsel %vm60_vm4, %v63_v47, %v65_v48  ;;  %vm240_vm1 = vcmask 255104  }
  0x9b   :  { %v74_v50 = vsel %vm60_vm4, %v71_v40, %v73_v45  ;;  %v346_v53 = vmul.u32.u64.low %v75_v46, %v70_v49  ;;  %v347_v54 = vmul.u32.u64.high %v75_v46, %v70_v49, %v346_v53  ;;  %v82_v57 = vmul.u32 %v75_v46, %v66_v55 }
  0x9c   :  { %v343_v51 = vmul.u32.u64.low %v75_v46, %v74_v50  ;;  %v344_v52 = vmul.u32.u64.high %v75_v46, %v74_v50, %v343_v51 }
  0x9d   :  { %v85_v56 = vadd.s32 1, %v347_v54 }
  0x9e   :  { %vm84_vm5 = vc.u32 %v344_v52, %v346_v53  ;;  %v83_v6 = vadd.s32 %v346_v53, %v344_v52 }
  0x9f   :  { %v86_v58 = vsel %vm84_vm5, %v85_v56, %v347_v54 }
  0xa0   :  { %v87_v59 = vadd.s32 %v86_v58, %v82_v57 }
  0xa2   :  { %v88_v60 = vadd.s32 536870912, %v87_v59 }
  0xa4   :  { %v89_v61 = vshrl.u32 %v88_v60, 30 }
  0xa6   :  { %v90_v62 = vshll.u32 %v89_v61, 30  ;;  %v113_v19 = vsub.s32 4, %v89_v61 }
  0xa8   :  { %v91_v63 = vsub.s32 %v87_v59, %v90_v62  ;;  %v114_v22 = vsel %vm29_vm7, %v113_v19, %v89_v61 }
  0xa9   :  { %v116_v24 = vsel %vm28_vm8, 0, %v114_v22 }
  0xaa   :  { %v93_v0 = vsub.s32 0, %v91_v63  ;;  %v120_v25 = vadd.s32 3, %v116_v24  ;;  %v226_v27 = vand.u32 3, %v116_v24 }
  0xac   :  { %v258_v1 = vmin.u32 %v93_v0, %v91_v63  ;;  %v121_v26 = vand.u32 3, %v120_v25  ;;  %vm231_vm10 = vcmp.eq.s32.totalorder %v226_v27, 2  ;;  %vm228_vm13 = vcmp.eq.s32.totalorder %v226_v27, 0 }
  0xad   :  { %vm227_vm15 = vcmp.lt.s32.totalorder %v226_v27, 2 }
  0xae   :  { %v95_v2 = vclz %v258_v1  ;;  %vm126_vm9 = vcmp.eq.s32.totalorder %v121_v26, 2  ;;  %vm123_vm12 = vcmp.eq.s32.totalorder %v121_v26, 0  ;;  %vm122_vm14 = vcmp.lt.s32.totalorder %v121_v26, 2 }
  0xb0   :  { %v259_v3 = vadd.s32 4294967294, %v95_v2 }
  0xb2   :  { %vm260_vm6 = vcmp.lt.s32.totalorder %v259_v3, 0 }
  0xb3   :  { %v98_v4 = vsel %vm260_vm6, 0, %v259_v3 }
  0xb4   :  { %v99_v7 = vsub.s32 32, %v98_v4  ;;  %v103_v8 = vsub.s32 4294967266, %v98_v4  ;;  %v100_v9 = vshll.u32 %v91_v63, %v98_v4 }
  0xb6   :  { %v101_v11 = vshrl.u32 %v83_v6, %v99_v7  ;;  %v104_v12 = vadd.s32 127, %v103_v8 }
  0xb8   :  { %v102_v13 = vor.u32 %v101_v11, %v100_v9  ;;  %v105_v14 = vshll.u32 %v104_v12, 23 }
  0xba   :  { %v106_v15 = vor.u32 4788187, %v105_v14  ;;  %v109_v17 = vcvt.s32.f32 %v102_v13 }
  0xbc   :  { %v107_v16 = vand.u32 2147483647, %v106_v15 }
  0xbe   :  { %v110_v18 = vmul.f32 %v109_v17, %v107_v16 }
  0xc0   :  { %v111_v20 = vxor.u32 2147483648, %v110_v18 }
  0xc2   :  { %v112_v21 = vsel %vm29_vm7, %v111_v20, %v110_v18 }
  0xc3   :  { %v115_v23 = vsel %vm28_vm8, %v337_v5, %v112_v21 }
  0xc4   :  { %279 = vcosq.f32 %v115_v23 }
  0xc5   :  { %281 = vsinq.f32 %v115_v23 }
  0xce   :  { %v280_v28 = vpop.eup %279 }
  0xcf   :  { %v282_v29 = vpop.eup %281  ;;  %v127_v30 = vxor.u32 2147483648, %v280_v28 }
  0xd0   :  { %v124_v31 = vxor.u32 2147483648, %v282_v29 }
  0xd1   :  { %v233_v32 = vsel %vm231_vm10, %v127_v30, %v282_v29  ;;  %v128_v10 = vsel %vm126_vm9, %v127_v30, %v282_v29 }
  0xd2   :  { %v230_v33 = vsel %vm228_vm13, %v280_v28, %v124_v31  ;;  %v125_v34 = vsel %vm123_vm12, %v280_v28, %v124_v31 }
  0xd3   :  { %v234_v35 = vsel %vm227_vm15, %v230_v33, %v233_v32  ;;  %v129_v36 = vsel %vm122_vm14, %v125_v34, %v128_v10 }
  0xd4   :  { %v235_v37 = vsel %vm119_vm0, nan, %v234_v35  ;;  %v130_v38 = vsel %vm119_vm0, nan, %v129_v36 }
  0xd5   :  { %237 = vrot.lane.b32.xlu0 %v235_v37, %s314_s0  ;;  %132 = vst.msk [vmem:[#allocation2] sm:$0x3] %vm131_vm11, %v130_v38 }
 0x147   :  { %v238_v39 = vpop.permute.xlu0 %237 }
 0x148   :  { %241 = vst.msk [vmem:[#allocation2] sm:$0x3] %vm240_vm1, %v238_v39 }
 0x149   :  { %294 = shalt.err (!%p291_p4)
}
 0x14a   :  { %s295_s17 = scalar_lea.hbm %s373_s2, 32 }
 0x14b   :  { %p296_p5 = scmp.ne.s32.totalorder %s373_s2, %s295_s17  ;;  %p299_p6 = scmp.lt.u32.totalorder %s295_s17, %s373_s2 }
 0x14d   :  { %p301_p7 = pnand %p299_p6, %p296_p5 }
 0x14f   :  { %304 = shalt.err (!%p301_p7)
}
 0x150   :  { %251 = dma.vmem_to_hbm [thread:$0]  %s249_s13, 32, %s373_s2, [#allocation3]  }
 0x151   :  { %305 = dma.done.wait [#allocation3], 32  }
 0x152   :  { %306 = vsyncadd [#allocation3], 4294967264 }
 0x153   :  { %255 = vsyncpa [#allocation3], 1 }

</bundles_post_ra>
